<compile_context>
chip_gen: v7x
topology: tpu7x:2x2x1
jax: 0.10.0
libtpu: 0.0.40
codegen_flags: <defaults>
</compile_context>

<pallas_src>
import jax
import jax.numpy as jnp
from jax.experimental import pallas as pl
from jax.experimental.pallas import tpu as pltpu

NEG_SLOPE = 0.01   # nn.LeakyReLU default negative_slope
BN_EPS = 1e-5      # nn.BatchNorm1d default eps
LANE = 128
SUBLANE = 8


def _round_up(v, m):
    return -(-v // m) * m


def _leaky_relu(h):
    return jnp.where(h > 0, h, NEG_SLOPE * h)


def _residual_block_kernel(x_ref, w1_ref, t1_ref, w2_ref, t2_ref, o_ref):
    """Fused (x @ W1' + t1') -> LeakyReLU -> (@ W2' + t2') -> LeakyReLU -> + x."""
    x = x_ref[...]                       # (tb, H) f32
    cd = w1_ref.dtype                    # MXU input dtype (bf16 or f32)

    h = jnp.dot(x.astype(cd), w1_ref[...], preferred_element_type=jnp.float32)
    h = _leaky_relu(h + t1_ref[...])
    # Dropout: identity (eval mode).

    h = jnp.dot(h.astype(cd), w2_ref[...], preferred_element_type=jnp.float32)
    h = _leaky_relu(h + t2_ref[...])
    # Dropout: identity (eval mode).

    o_ref[...] = (x + h).astype(o_ref.dtype)   # residual add in f32


def make_raw_params(hidden_size, key):
    """Deterministic synthetic parameters matching nn.Linear / nn.BatchNorm1d."""
    k = jax.random.split(key, 10)
    return {
        "w1": jax.random.normal(k[0], (hidden_size, hidden_size), jnp.float32) * 0.05,
        "b1": jax.random.normal(k[1], (hidden_size,), jnp.float32) * 0.05,
        "w2": jax.random.normal(k[2], (hidden_size, hidden_size), jnp.float32) * 0.05,
        "b2": jax.random.normal(k[3], (hidden_size,), jnp.float32) * 0.05,
        "g1": 1.0 + 0.1 * jax.random.normal(k[4], (hidden_size,), jnp.float32),
        "be1": 0.1 * jax.random.normal(k[5], (hidden_size,), jnp.float32),
        "m1": 0.1 * jax.random.normal(k[6], (hidden_size,), jnp.float32),
        "v1": jnp.abs(1.0 + 0.1 * jax.random.normal(k[7], (hidden_size,), jnp.float32)),
        "g2": 1.0 + 0.1 * jax.random.normal(k[8], (hidden_size,), jnp.float32),
        "be2": 0.1 * jax.random.normal(k[9], (hidden_size,), jnp.float32),
        "m2": jnp.zeros((hidden_size,), jnp.float32),
        "v2": jnp.ones((hidden_size,), jnp.float32),
    }


def fold_params(raw, weight_dtype=jnp.bfloat16):
    """One-time fold: BN(eval) affine + Linear bias -> (W', t').

    Only the *intermediate* hidden dim is padded to a lane multiple:
      W1' : (H, Hp), t1' : (1, Hp), W2' : (Hp, H), t2' : (1, H)
    so x and the output keep their native width H (no HBM pad/slice traffic).
    """
    H = raw["w1"].shape[0]
    Hp = _round_up(H, LANE)

    s1 = raw["g1"] / jnp.sqrt(raw["v1"] + BN_EPS)
    t1 = raw["be1"] - raw["m1"] * s1
    s2 = raw["g2"] / jnp.sqrt(raw["v2"] + BN_EPS)
    t2 = raw["be2"] - raw["m2"] * s2

    # Linear then BN:  (x @ W.T + b) * s + t  ==  x @ (W.T * s) + (b * s + t)
    w1f = raw["w1"].T * s1[None, :]
    t1f = raw["b1"] * s1 + t1
    w2f = raw["w2"].T * s2[None, :]
    t2f = raw["b2"] * s2 + t2

    w1p = jnp.zeros((H, Hp), jnp.float32).at[:, :H].set(w1f).astype(weight_dtype)
    t1p = jnp.zeros((1, Hp), jnp.float32).at[0, :H].set(t1f)
    w2p = jnp.zeros((Hp, H), jnp.float32).at[:H, :].set(w2f).astype(weight_dtype)
    t2p = t2f.reshape(1, H).astype(jnp.float32)

    return {"w1": w1p, "t1": t1p, "w2": w2p, "t2": t2p,
            "hidden": H, "hidden_padded": Hp}


def _const_specs(shapes):
    """BlockSpecs for operands whose block index never changes.

    Single pipeline buffer (pl.Buffered(1)) -> stays resident in VMEM without a
    wasted second buffer.  Falls back to the default on older jax.
    Returns (specs, buffer_count) so the VMEM estimate matches reality.
    """
    try:
        specs = [pl.BlockSpec(s, lambda i: (0, 0), pipeline_mode=pl.Buffered(1))
                 for s in shapes]
        return specs, 1
    except (AttributeError, TypeError):
        return [pl.BlockSpec(s, lambda i: (0, 0)) for s in shapes], 2


def residual_block_small_batchnorm(x, params, *, batch_tile=256, out_dtype=None):
    """x: (B, H) float32. params: output of fold_params()."""
    B, H = x.shape
    Hp = params["hidden_padded"]
    assert params["hidden"] == H, "params were folded for a different hidden size"
    out_dtype = x.dtype if out_dtype is None else out_dtype

    # Batch tile selection (no padded copy of x; pl.cdiv grid handles the
    # partial last block):
    #   * tiny batch  -> single full-dim block (legal for any B).
    #   * B >= 16     -> multiple of 8 sublanes AND at least 2 grid steps so
    #                    the "parallel" axis shards across both v7x TCs.
    if B < 2 * SUBLANE:
        tb = B
    else:
        half = _round_up(-(-B // 2), SUBLANE)
        tb = min(max(SUBLANE, (batch_tile // SUBLANE) * SUBLANE), half)
    grid_b = pl.cdiv(B, tb)

    w_specs, w_bufs = _const_specs([(H, Hp), (1, Hp), (Hp, H), (1, H)])

    w_bytes = jnp.dtype(params["w1"].dtype).itemsize
    out_bytes = jnp.dtype(out_dtype).itemsize

    # Generation-aware VMEM budget: resident weights/shifts (w_bufs buffers) +
    # double-buffered x/out tiles + scratch for f32 h tiles and bf16 cast
    # copies; 30% headroom, capped at ~85% of physical per-core VMEM.
    try:
        vmem_cap = int(pltpu.get_tpu_info().vmem_capacity_bytes)
    except Exception:  # pragma: no cover - conservative (v7x-sized) fallback
        vmem_cap = 64 * 1024 * 1024
    resident = w_bufs * (2 * H * Hp * w_bytes + (Hp + H) * 4)
    streamed = 2 * tb * H * 4 + 2 * tb * H * out_bytes
    scratch = 3 * tb * Hp * 4
    vmem_limit = int(min(0.85 * vmem_cap,
                         max(32 * 1024 * 1024,
                             1.3 * (resident + streamed + scratch))))

    # TODO(synk): if `resident` exceeds ~60% of vmem_cap (H >~ 3.5-4K bf16 on
    #             v7x), switch to K-streamed weights (pl.ANY + emit_pipeline).

    flops = 4 * B * H * Hp                      # two matmuls, 2*M*N*K each
    bytes_accessed = (B * H * 4 + B * H * out_bytes
                      + 2 * H * Hp * w_bytes + (Hp + H) * 4)

    out = pl.pallas_call(
        _residual_block_kernel,
        out_shape=jax.ShapeDtypeStruct((B, H), out_dtype),
        grid=(grid_b,),
        in_specs=[
            # Activations: streamed / double-buffered along the batch grid.
            pl.BlockSpec((tb, H), lambda i: (i, 0)),
            # Weights / shifts: constant block index, single-buffered resident.
            w_specs[0], w_specs[1], w_specs[2], w_specs[3],
        ],
        out_specs=pl.BlockSpec((tb, H), lambda i: (i, 0)),
        compiler_params=pltpu.CompilerParams(
            dimension_semantics=("parallel",),   # batch axis -> both TCs on v7x
            vmem_limit_bytes=vmem_limit,
        ),
        cost_estimate=pl.CostEstimate(flops=int(flops),
                                      transcendentals=0,
                                      bytes_accessed=int(bytes_accessed)),
    )(x.astype(jnp.float32),
      params["w1"], params["t1"], params["w2"], params["t2"])

    return out


def reference(x, raw):
    """Pure-JAX f32 reference mirroring the PyTorch module in eval mode."""
    def bn(h, g, b, m, v):
        return (h - m) / jnp.sqrt(v + BN_EPS) * g + b

    h = x @ raw["w1"].T + raw["b1"]
    h = bn(h, raw["g1"], raw["be1"], raw["m1"], raw["v1"])
    h = jnp.where(h > 0, h, NEG_SLOPE * h)
    # Dropout: identity (eval mode)
    h = h @ raw["w2"].T + raw["b2"]
    h = bn(h, raw["g2"], raw["be2"], raw["m2"], raw["v2"])
    h = jnp.where(h > 0, h, NEG_SLOPE * h)
    return x + h


if __name__ == "__main__":
    hidden_size = 32
    batch = 8
    dropout_rate = 0.1   # unused: eval mode => dropout is the identity

    key = jax.random.PRNGKey(0)
    kx, kp, kx2 = jax.random.split(key, 3)
    x = jax.random.normal(kx, (batch, hidden_size), jnp.float32)
    raw = make_raw_params(hidden_size, kp)
    ref = reference(x, raw)

    # f32-weight path: tight check of the fused kernel + BN/bias folding.
    params_f32 = fold_params(raw, jnp.float32)
    out_f32 = jax.block_until_ready(residual_block_small_batchnorm(x, params_f32))
    assert out_f32.shape == (batch, hidden_size)
    assert jnp.max(jnp.abs(out_f32 - ref)) < 5e-3

    # bf16 MXU-input path (recommended perf config): bounded by bf16 cast of
    # the activations before each matmul (deliberate deviation from all-f32).
    params_bf16 = fold_params(raw, jnp.bfloat16)
    out_bf16 = jax.block_until_ready(residual_block_small_batchnorm(x, params_bf16))
    assert out_bf16.shape == (batch, hidden_size)
    assert jnp.max(jnp.abs(out_bf16 - ref)) < 5e-2

    # Multi-step "parallel" grid with a partial last batch block: no padded
    # copy of x / no output slice is materialized on the host side.
    batch2 = 20
    x2 = jax.random.normal(kx2, (batch2, hidden_size), jnp.float32)
    ref2 = reference(x2, raw)
    out2 = jax.block_until_ready(residual_block_small_batchnorm(x2, params_f32))
    assert out2.shape == (batch2, hidden_size)
    assert jnp.max(jnp.abs(out2 - ref2)) < 5e-3

    print("KERNEL_OK")
</pallas_src>

<mosaic_0001>
module attributes {stable_mosaic.version = 11 : i64} {
  func.func @_residual_block_kernel(%arg0: i32, %arg1: memref<8x32xf32, #tpu.memory_space<vmem>>, %arg2: memref<32x128xf32, #tpu.memory_space<vmem>>, %arg3: memref<1x128xf32, #tpu.memory_space<vmem>>, %arg4: memref<128x32xf32, #tpu.memory_space<vmem>>, %arg5: memref<1x32xf32, #tpu.memory_space<vmem>>, %arg6: memref<8x32xf32, #tpu.memory_space<vmem>>) attributes {dimension_semantics = [#tpu.dimension_semantics<parallel>], iteration_bounds = array<i64: 1>, scalar_prefetch = 0 : i64, scratch_operands = 0 : i64, tpu.core_type = #tpu.core_type<tc>, window_params = [{transform_indices = @transform_0, window_bounds = array<i64: 8, 32>}, {pipeline_mode = #tpu.pipeline_mode<synchronous>, transform_indices = @transform_1, window_bounds = array<i64: 32, 128>}, {pipeline_mode = #tpu.pipeline_mode<synchronous>, transform_indices = @transform_2, window_bounds = array<i64: 1, 128>}, {pipeline_mode = #tpu.pipeline_mode<synchronous>, transform_indices = @transform_3, window_bounds = array<i64: 128, 32>}, {pipeline_mode = #tpu.pipeline_mode<synchronous>, transform_indices = @transform_4, window_bounds = array<i64: 1, 32>}, {transform_indices = @transform_5, window_bounds = array<i64: 8, 32>}]} {
    %c0 = arith.constant 0 : index
    %c0_0 = arith.constant 0 : index
    %0 = vector.load %arg1[%c0, %c0_0] : memref<8x32xf32, #tpu.memory_space<vmem>>, vector<8x32xf32>
    %c0_1 = arith.constant 0 : index
    %c0_2 = arith.constant 0 : index
    %1 = vector.load %arg2[%c0_1, %c0_2] : memref<32x128xf32, #tpu.memory_space<vmem>>, vector<32x128xf32>
    %cst = arith.constant dense<0.000000e+00> : vector<8x128xf32>
    %2 = tpu.matmul %0, %1, %cst {dimension_numbers = #tpu.dot_dimension_numbers<[1], [0], [0], [1], [0, 0, 1, 1], [], []>} : vector<8x32xf32>, vector<32x128xf32>, vector<8x128xf32> -> vector<8x128xf32>
    %c0_3 = arith.constant 0 : index
    %c0_4 = arith.constant 0 : index
    %3 = vector.load %arg3[%c0_3, %c0_4] : memref<1x128xf32, #tpu.memory_space<vmem>>, vector<1x128xf32>
    %4 = vector.broadcast %3 : vector<1x128xf32> to vector<8x128xf32>
    %5 = arith.addf %2, %4 : vector<8x128xf32>
    %cst_5 = arith.constant 0.000000e+00 : f32
    %6 = vector.broadcast %cst_5 : f32 to vector<8x128xf32>
    %7 = arith.cmpf ogt, %5, %6 : vector<8x128xf32>
    %cst_6 = arith.constant 0.00999999977 : f32
    %8 = vector.broadcast %cst_6 : f32 to vector<8x128xf32>
    %9 = arith.mulf %8, %5 : vector<8x128xf32>
    %10 = arith.select %7, %5, %9 : vector<8x128xi1>, vector<8x128xf32>
    %c0_7 = arith.constant 0 : index
    %c0_8 = arith.constant 0 : index
    %11 = vector.load %arg4[%c0_7, %c0_8] : memref<128x32xf32, #tpu.memory_space<vmem>>, vector<128x32xf32>
    %cst_9 = arith.constant dense<0.000000e+00> : vector<8x32xf32>
    %12 = tpu.matmul %10, %11, %cst_9 {dimension_numbers = #tpu.dot_dimension_numbers<[1], [0], [0], [1], [0, 0, 1, 1], [], []>} : vector<8x128xf32>, vector<128x32xf32>, vector<8x32xf32> -> vector<8x32xf32>
    %c0_10 = arith.constant 0 : index
    %c0_11 = arith.constant 0 : index
    %13 = vector.load %arg5[%c0_10, %c0_11] : memref<1x32xf32, #tpu.memory_space<vmem>>, vector<1x32xf32>
    %14 = vector.broadcast %13 : vector<1x32xf32> to vector<8x32xf32>
    %15 = arith.addf %12, %14 : vector<8x32xf32>
    %cst_12 = arith.constant 0.000000e+00 : f32
    %16 = vector.broadcast %cst_12 : f32 to vector<8x32xf32>
    %17 = arith.cmpf ogt, %15, %16 : vector<8x32xf32>
    %cst_13 = arith.constant 0.00999999977 : f32
    %18 = vector.broadcast %cst_13 : f32 to vector<8x32xf32>
    %19 = arith.mulf %18, %15 : vector<8x32xf32>
    %20 = arith.select %17, %15, %19 : vector<8x32xi1>, vector<8x32xf32>
    %21 = arith.addf %0, %20 : vector<8x32xf32>
    %c0_14 = arith.constant 0 : index
    %c0_15 = arith.constant 0 : index
    %22 = vector.load %arg6[%c0_14, %c0_15] : memref<8x32xf32, #tpu.memory_space<vmem>>, vector<8x32xf32>
    tpu.vector_store %arg6[%c0_14, %c0_15], %21 {strides = array<i32>} : memref<8x32xf32, #tpu.memory_space<vmem>>, vector<8x32xf32>,
    return
  }
  func.func @transform_0(%arg0: i32) -> (i32, i32) {
    %c0_i32 = arith.constant 0 : i32
    %c0_i32_0 = arith.constant 0 : i32
    return %arg0, %c0_i32 : i32, i32
  }
  func.func @transform_1(%arg0: i32) -> (i32, i32) {
    %c0_i32 = arith.constant 0 : i32
    %c0_i32_0 = arith.constant 0 : i32
    %c0_i32_1 = arith.constant 0 : i32
    return %c0_i32, %c0_i32_0 : i32, i32
  }
  func.func @transform_2(%arg0: i32) -> (i32, i32) {
    %c0_i32 = arith.constant 0 : i32
    %c0_i32_0 = arith.constant 0 : i32
    %c0_i32_1 = arith.constant 0 : i32
    return %c0_i32, %c0_i32_0 : i32, i32
  }
  func.func @transform_3(%arg0: i32) -> (i32, i32) {
    %c0_i32 = arith.constant 0 : i32
    %c0_i32_0 = arith.constant 0 : i32
    %c0_i32_1 = arith.constant 0 : i32
    return %c0_i32, %c0_i32_0 : i32, i32
  }
  func.func @transform_4(%arg0: i32) -> (i32, i32) {
    %c0_i32 = arith.constant 0 : i32
    %c0_i32_0 = arith.constant 0 : i32
    %c0_i32_1 = arith.constant 0 : i32
    return %c0_i32, %c0_i32_0 : i32, i32
  }
  func.func @transform_5(%arg0: i32) -> (i32, i32) {
    %c0_i32 = arith.constant 0 : i32
    %c0_i32_0 = arith.constant 0 : i32
    return %arg0, %c0_i32 : i32, i32
  }
}

</mosaic_0001>

<bundles_post_ra>
// kernel: tpu_custom_call.1
= control target key start
LH: loop header
LB: loop body
LE: loop exit
PB: predicated region body
PF: predicated region fallthrough
CT: control target
= control target key end

     0   :  { %v351_v3 = vmov 0.0|0.0   ;;  %vm352_vm0 = vmmov 0   ;;  %v353_v6 = vmov 0.0   ;;  %s468_s0 = inlined_call_operand.vmem [shape: f32[8,32], index: 0, kind: input, shape index: {}]   ;;  %s469_s1 = inlined_call_operand.vmem [shape: f32[32,128], index: 1, kind: input, shape index: {}]   ;;  %s470_s2 = inlined_call_operand.vmem [shape: f32[1,128], index: 2, kind: input, shape index: {}]   ;;  %s471_s3 = inlined_call_operand.vmem [shape: f32[128,32], index: 3, kind: input, shape index: {}]   ;;  %s472_s4 = inlined_call_operand.vmem [shape: f32[1,32], index: 4, kind: input, shape index: {}]   ;;  %s473_s5 = inlined_call_operand.hbm [shape: f32[8,32], index: 5, kind: output, shape index: {}]  }
   0x1   :  { %v22_v0 = vld [vmem:[%s469_s1] sm:$0xff]  ;;  %v23_v1 = vld [vmem:[%s469_s1 + $0x8] sm:$0xff]  ;;  %v24_v2 = vld [vmem:[%s469_s1 + $0x10] sm:$0xff]  ;;  %293 = vmatprep.subr.bf16.mxu0 %v351_v3  ;;  %255 = vmatprep.mubr.msk.f32.mxu0 %vm352_vm0, %v353_v6 }
   0x2   :  { %v294_v4 = vpack.c.bf16 %v23_v1, %v22_v0  ;;  %v25_v5 = vld [vmem:[%s469_s1 + $0x18] sm:$0xff]  ;;  %v110_v7 = vld [vmem:[%s471_s3] sm:$0xff]  ;;  %299 = vmatprep.subr.bf16.mxu1 %v351_v3  ;;  %v111_v8 = vld [vmem:[%s471_s3 + $0x8] sm:$0xff]  ;;  %290 = vmatprep.mubr.msk.f32.mxu1 %vm352_vm0, %v353_v6 }
   0x3   :  { %v112_v9 = vld [vmem:[%s471_s3 + $0x10] sm:$0xff]  ;;  %v113_v10 = vld [vmem:[%s471_s3 + $0x18] sm:$0xff]  ;;  %v297_v11 = vpack.c.bf16 %v25_v5, %v24_v2  ;;  %v300_v12 = vpack.c.bf16 %v111_v8, %v110_v7  ;;  %v114_v14 = vld [vmem:[%s471_s3 + $0x20] sm:$0xff] }
   0x4   :  { %295 = vmatpush3.bf16.msra.mxu0 %v294_v4  ;;  %v303_v13 = vpack.c.bf16 %v113_v10, %v112_v9  ;;  %v115_v15 = vld [vmem:[%s471_s3 + $0x28] sm:$0xff] }
   0x5   :  { %296 = vmatprep.subr.bf16.mxu0 %v351_v3  ;;  %301 = vmatpush3.bf16.msra.mxu1 %v300_v12 }
   0x6   :  { %302 = vmatprep.subr.bf16.mxu1 %v351_v3 }
   0x7   :  { %10 = vsyncpa [#allocation3], 0  ;;  %v21_v16 = vld [vmem:[%s468_s0] sm:$0xff]  ;;  %vm33_vm1 = vcmask 261120   ;;  %v306_v17 = vpack.c.bf16 %v115_v15, %v114_v14  ;;  %v116_v18 = vld [vmem:[%s471_s3 + $0x30] sm:$0xff] }
   0x8   :  { %298 = vmatpush3.bf16.msra.mxu0 %v297_v11  ;;  %v117_v19 = vld [vmem:[%s471_s3 + $0x38] sm:$0xff]  ;;  %v118_v21 = vld [vmem:[%s471_s3 + $0x40] sm:$0xff]  ;;  %v119_v22 = vld [vmem:[%s471_s3 + $0x48] sm:$0xff] }
   0x9   :  { %304 = vmatpush3.bf16.msra.mxu1 %v303_v13  ;;  %v309_v20 = vpack.c.bf16 %v117_v19, %v116_v18  ;;  %v312_v23 = vpack.c.bf16 %v119_v22, %v118_v21  ;;  %v120_v24 = vld [vmem:[%s471_s3 + $0x50] sm:$0xff]  ;;  %v121_v25 = vld [vmem:[%s471_s3 + $0x58] sm:$0xff]  ;;  %v122_v27 = vld [vmem:[%s471_s3 + $0x60] sm:$0xff] }
   0xa   :  { %305 = vmatprep.subr.bf16.mxu1 %v351_v3  ;;  %v315_v26 = vpack.c.bf16 %v121_v25, %v120_v24  ;;  %v123_v28 = vld [vmem:[%s471_s3 + $0x68] sm:$0xff]  ;;  %v124_v30 = vld [vmem:[%s471_s3 + $0x70] sm:$0xff]  ;;  %v125_v31 = vld [vmem:[%s471_s3 + $0x78] sm:$0xff]  ;;  %s354_s3 = smov [#allocation2]  }
   0xb   :  { %256 = vmatmul.mubr.msk.f32.vlgmr.msra.gmra.mrb[0].mxu0 %vm33_vm1, %v21_v16  ;;  %v318_v29 = vpack.c.bf16 %v123_v28, %v122_v27  ;;  %v321_v32 = vpack.c.bf16 %v125_v31, %v124_v30  ;;  %v222_v33 = vld [vmem:[%s470_s2] ss:$0 sm:$0xff]  ;;  %s214_s11 = sshll.u32 %s354_s3, 4  ;;  %s215_s11 = int_to_ptr.vmem [resolvable:$true] %s214_s11 }
   0xc   :  { %v224_v39 = vld [vmem:[%s472_s4] ss:$0 sm:$0xff]  ;;  %s327_s2 = scalar_lea.vmem %s215_s11, 128  ;;  %p332_p1 = scmp.lt.s32.totalorder %s215_s11, %s215_s11 }
   0xd   :  { %307 = vmatpush3.bf16.msra.mxu1 %v306_v17  ;;  %p328_p0 = scmp.ne.s32.totalorder %s215_s11, %s327_s2  ;;  %p333_p2 = scmp.lt.s32.totalorder %s327_s2, %s327_s2 }
   0xe   :  { %308 = vmatprep.subr.bf16.mxu1 %v351_v3 }
   0xf   :  { %p334_p3 = por %p333_p2, %p332_p1 }
  0x11   :  { %310 = vmatpush3.bf16.msra.mxu1 %v309_v20  ;;  %p335_p4 = pnand %p334_p3, %p328_p0 }
  0x12   :  { %311 = vmatprep.subr.bf16.mxu1 %v351_v3 }
  0x15   :  { %313 = vmatpush3.bf16.msra.mxu1 %v312_v23 }
  0x16   :  { %314 = vmatprep.subr.bf16.mxu1 %v351_v3 }
  0x19   :  { %316 = vmatpush3.bf16.msra.mxu1 %v315_v26 }
  0x1a   :  { %317 = vmatprep.subr.bf16.mxu1 %v351_v3 }
  0x1d   :  { %319 = vmatpush3.bf16.msra.mxu1 %v318_v29 }
  0x1e   :  { %320 = vmatprep.subr.bf16.mxu1 %v351_v3 }
  0x21   :  { %322 = vmatpush3.bf16.msra.mxu1 %v321_v32 }
  0xde   :  { %v103_v34 = vpop.f32.mrb[0].mxu0 }
  0xdf   :  { %v104_v35 = vadd.f32 %v222_v33, %v103_v34  ;;  %v257_v36 = vpop.f32.mrb[1].mxu0 }
  0xe1   :  { %v108_v37 = vmul.f32 0.01, %v104_v35  ;;  %vm107_vm2 = vcmp.gt.f32.partialorder %v104_v35, 0.0 }
  0xe3   :  { %v109_v38 = vsel %vm107_vm2, %v104_v35, %v108_v37 }
  0xe4   :  { %291 = vmatmul.mubr.f32.vlgmr.msra.gmra.mrb[0].mxu1 %v109_v38 }
 0x1b7   :  { %v199_v40 = vpop.f32.mrb[0].mxu1 }
 0x1b8   :  { %v200_v41 = vadd.f32 %v224_v39, %v199_v40  ;;  %v292_v42 = vpop.f32.mrb[1].mxu1 }
 0x1ba   :  { %vm203_vm3 = vcmp.gt.f32.partialorder %v200_v41, 0.0  ;;  %v204_v43 = vmul.f32 0.01, %v200_v41 }
 0x1bc   :  { %v205_v44 = vsel %vm203_vm3, %v200_v41, %v204_v43 }
 0x1bd   :  { %v206_v45 = vadd.f32 %v205_v44, %v21_v16 }
 0x1bf   :  { %207 = vst.msk [vmem:[#allocation2] sm:$0xff] %vm33_vm1, %v206_v45 }
 0x1c0   :  { %338 = shalt.err (!%p335_p4)
}
 0x1c1   :  { %s339_s13 = scalar_lea.hbm %s473_s5, 128 }
 0x1c2   :  { %p340_p5 = scmp.ne.s32.totalorder %s473_s5, %s339_s13  ;;  %p343_p6 = scmp.lt.u32.totalorder %s339_s13, %s473_s5 }
 0x1c4   :  { %p345_p7 = pnand %p343_p6, %p340_p5 }
 0x1c6   :  { %348 = shalt.err (!%p345_p7)
}
 0x1c7   :  { %217 = dma.vmem_to_hbm [thread:$0]  %s215_s11, 128, %s473_s5, [#allocation3]  }
 0x1c8   :  { %349 = dma.done.wait [#allocation3], 128  }
 0x1c9   :  { %350 = vsyncadd [#allocation3], 4294967168 }
 0x1ca   :  { %221 = vsyncpa [#allocation3], 1 }

</bundles_post_ra>
